<compile_context>
chip_gen: v7x
topology: tpu7x:2x2x1
jax: 0.10.0
libtpu: 0.0.40
codegen_flags: <defaults>
</compile_context>

<pallas_src>
import jax
import jax.numpy as jnp
from jax.experimental import pallas as pl
from jax.experimental.pallas import tpu as pltpu


def _round_up(x, m):
    return (x + m - 1) // m * m


def gin_conv_kernel(agg_ref, proj_ref, bias_ref, out_ref):
    """One (row-tile, K-tile) grid step of out = ReLU(agg @ proj + bias).

    agg_ref  : (tm, tk)      bf16  [inc | adj] tile
    proj_ref : (tk, emb_pad) bf16  [P_e ; P_n] tile
    bias_ref : (1, emb_pad)  f32   resident (same block every step)
    out_ref  : (tm, emb_pad) f32   resident across the K axis -> accumulator
    """
    k = pl.program_id(1)

    @pl.when(k == 0)
    def _():
        out_ref[...] = jnp.zeros_like(out_ref)

    out_ref[...] += jnp.dot(agg_ref[...], proj_ref[...],
                            preferred_element_type=jnp.float32)

    @pl.when(k == pl.num_programs(1) - 1)
    def _():
        out_ref[...] = jnp.maximum(out_ref[...] + bias_ref[...], 0.0)


def gin_conv(src, dst, node_feat, edge_feat, weight, bias, *,
             tm_max=512, tk_max=2048):
    """GINConv forward.

    src, dst   : (E,) int32 directed edges
    node_feat  : (N, node_dim) f32
    edge_feat  : (E, edge_dim) f32
    weight     : (emb_dim, edge_dim + node_dim) f32  (PyTorch nn.Linear layout)
    bias       : (emb_dim,) f32
    returns    : (N, emb_dim) f32
    """
    n_nodes, node_dim = node_feat.shape
    n_edges, edge_dim = edge_feat.shape
    emb_dim = weight.shape[0]

    # --- dgl.add_self_loop: self loops appended at the end, attr = e_{edge_dim-1}
    node_ids = jnp.arange(n_nodes, dtype=src.dtype)
    src_full = jnp.concatenate([src, node_ids])                       # (E+N,)
    dst_full = jnp.concatenate([dst, node_ids])                       # (E+N,)
    e_tot = n_edges + n_nodes
    k_dim = e_tot + n_nodes

    # --- tile sizes / padded extents --------------------------------------
    tm = min(tm_max, _round_up(n_nodes, 16))          # 16: bf16 sublane packing
    if _round_up(n_nodes, tm) // tm < 2 and tm > 16:
        # Split rows so the "parallel" axis can span both v7x TensorCores.
        tm = max(16, _round_up(-(-n_nodes // 2), 16))
    tk = min(tk_max, _round_up(k_dim, 128))
    n_pad = _round_up(n_nodes, tm)
    k_pad = _round_up(k_dim, tk)
    emb_pad = 128 if emb_dim <= 128 else _round_up(emb_dim, 256)

    # --- dense aggregation operator, built once, directly in padded bf16 ---
    # (0/1 entries and small integer edge multiplicities are exact in bf16.)
    agg_p = jnp.zeros((n_pad, k_pad), jnp.bfloat16)
    agg_p = agg_p.at[dst_full, jnp.arange(e_tot)].set(1.0)            # inc part
    agg_p = agg_p.at[dst_full, e_tot + src_full].add(1.0)             # adj part

    # --- projected features, built once, directly in padded bf16 -----------
    self_loop_attr = jnp.zeros((n_nodes, edge_dim), jnp.bfloat16).at[:, -1].set(1.0)
    edge_feat_full = jnp.concatenate(
        [edge_feat.astype(jnp.bfloat16), self_loop_attr], axis=0)     # (E+N, edge_dim)

    w_t = weight.T                                                    # (edge+node, emb)
    w_e = jnp.zeros((edge_dim, emb_pad), jnp.bfloat16).at[:, :emb_dim].set(
        w_t[:edge_dim].astype(jnp.bfloat16))
    w_n = jnp.zeros((node_dim, emb_pad), jnp.bfloat16).at[:, :emb_dim].set(
        w_t[edge_dim:].astype(jnp.bfloat16))

    proj_p = jnp.zeros((k_pad, emb_pad), jnp.bfloat16)
    proj_p = proj_p.at[:e_tot].set(edge_feat_full @ w_e)              # P_e
    proj_p = proj_p.at[e_tot:e_tot + n_nodes].set(
        node_feat.astype(jnp.bfloat16) @ w_n)                         # P_n

    bias_p = jnp.zeros((1, emb_pad), jnp.float32).at[0, :emb_dim].set(
        bias.astype(jnp.float32))

    grid = (n_pad // tm, k_pad // tk)

    # VMEM budget: double-buffered agg + proj tiles (bf16), resident f32 out
    # tile (x2 buffers) and bias; 1.5x headroom, clamped to [32 MiB, 64 MiB]
    # so it raises v5e's 16 MiB default without exceeding v7x's physical VMEM.
    vmem_bytes = (2 * tm * tk * 2
                  + 2 * tk * emb_pad * 2
                  + 2 * tm * emb_pad * 4
                  + 2 * 8 * emb_pad * 4)
    vmem_limit = int(min(max(vmem_bytes * 3 // 2, 32 * 1024 * 1024),
                         64 * 1024 * 1024))

    out_p = pl.pallas_call(
        gin_conv_kernel,
        out_shape=jax.ShapeDtypeStruct((n_pad, emb_pad), jnp.float32),
        grid_spec=pltpu.PrefetchScalarGridSpec(
            num_scalar_prefetch=0,
            grid=grid,
            in_specs=[
                pl.BlockSpec((tm, tk), lambda i, k: (i, k)),          # [inc|adj]
                pl.BlockSpec((tk, emb_pad), lambda i, k: (k, 0)),     # [P_e;P_n]
                pl.BlockSpec((1, emb_pad), lambda i, k: (0, 0)),      # bias
            ],
            out_specs=pl.BlockSpec((tm, emb_pad), lambda i, k: (i, 0)),
        ),
        compiler_params=pltpu.CompilerParams(
            dimension_semantics=("parallel", "arbitrary"),
            vmem_limit_bytes=vmem_limit),
    )(agg_p, proj_p, bias_p)

    return out_p[:n_nodes, :emb_dim]


if __name__ == "__main__":
    key = jax.random.PRNGKey(0)
    N, E, node_dim, edge_dim, emb_dim = 8, 16, 16, 8, 32
    k1, k2, k3, k4, k5, k6 = jax.random.split(key, 6)

    # Synthetic graph: E directed edges over N nodes.
    src = jax.random.randint(k1, (E,), 0, N)
    dst = jax.random.randint(k2, (E,), 0, N)
    node_feat = jax.random.normal(k3, (N, node_dim), jnp.float32)
    edge_feat = jax.random.normal(k4, (E, edge_dim), jnp.float32)

    # nn.Linear(node_dim + edge_dim, emb_dim) parameters.
    weight = 0.1 * jax.random.normal(k5, (emb_dim, node_dim + edge_dim), jnp.float32)
    bias = 0.1 * jax.random.normal(k6, (emb_dim,), jnp.float32)

    out = gin_conv(src, dst, node_feat, edge_feat, weight, bias)
    out = jax.block_until_ready(out)

    # Pure-JAX f32 reference (mirrors the DGL scatter-add message passing).
    src_full = jnp.concatenate([src, jnp.arange(N)])
    dst_full = jnp.concatenate([dst, jnp.arange(N)])
    self_loop_attr = jnp.zeros((N, edge_dim), jnp.float32).at[:, -1].set(1.0)
    edge_feat_full = jnp.concatenate([edge_feat, self_loop_attr], axis=0)
    msg = jnp.concatenate([edge_feat_full, node_feat[src_full]], axis=1)
    h_neigh = jnp.zeros((N, edge_dim + node_dim), jnp.float32).at[dst_full].add(msg)
    ref = jnp.maximum(h_neigh @ weight.T + bias, 0.0)

    assert out.shape == (N, emb_dim)
    # bf16 operands (aggregation matrix is exact; projected features lose
    # ~3 decimal digits) with f32 MXU accumulation -> slightly relaxed tolerance.
    max_err = float(jnp.max(jnp.abs(out - ref)))
    assert jnp.allclose(out, ref, atol=5e-2, rtol=5e-2), f"max_err={max_err}"

    print("KERNEL_OK")
</pallas_src>

<mosaic_0001>
module attributes {stable_mosaic.version = 11 : i64} {
  func.func @gin_conv_kernel(%arg0: i32, %arg1: i32, %arg2: memref<16x128xbf16, #tpu.memory_space<vmem>>, %arg3: memref<128x128xbf16, #tpu.memory_space<vmem>>, %arg4: memref<1x128xf32, #tpu.memory_space<vmem>>, %arg5: memref<16x128xf32, #tpu.memory_space<vmem>>) attributes {dimension_semantics = [#tpu.dimension_semantics<parallel>, #tpu.dimension_semantics<arbitrary>], iteration_bounds = array<i64: 1, 1>, scalar_prefetch = 0 : i64, scratch_operands = 0 : i64, tpu.core_type = #tpu.core_type<tc>, window_params = [{transform_indices = @transform_0, window_bounds = array<i64: 16, 128>}, {transform_indices = @transform_1, window_bounds = array<i64: 128, 128>}, {pipeline_mode = #tpu.pipeline_mode<synchronous>, transform_indices = @transform_2, window_bounds = array<i64: 1, 128>}, {transform_indices = @transform_3, window_bounds = array<i64: 16, 128>}]} {
    %c0_i32 = arith.constant 0 : i32
    %0 = arith.cmpi eq, %arg1, %c0_i32 : i32
    %1 = arith.extui %0 : i1 to i32
    %c0_i32_0 = arith.constant 0 : i32
    %2 = arith.cmpi ne, %1, %c0_i32_0 : i32
    scf.if %2 {
      %cst_10 = arith.constant 0.000000e+00 : f32
      %12 = vector.broadcast %cst_10 : f32 to vector<16x128xf32>
      %c0_11 = arith.constant 0 : index
      %c0_12 = arith.constant 0 : index
      %13 = vector.load %arg5[%c0_11, %c0_12] : memref<16x128xf32, #tpu.memory_space<vmem>>, vector<16x128xf32>
      tpu.vector_store %arg5[%c0_11, %c0_12], %12 {strides = array<i32>} : memref<16x128xf32, #tpu.memory_space<vmem>>, vector<16x128xf32>,
    } else {
    }
    %c0 = arith.constant 0 : index
    %c0_1 = arith.constant 0 : index
    %3 = vector.load %arg5[%c0, %c0_1] : memref<16x128xf32, #tpu.memory_space<vmem>>, vector<16x128xf32>
    %c0_2 = arith.constant 0 : index
    %c0_3 = arith.constant 0 : index
    %4 = vector.load %arg2[%c0_2, %c0_3] : memref<16x128xbf16, #tpu.memory_space<vmem>>, vector<16x128xbf16>
    %c0_4 = arith.constant 0 : index
    %c0_5 = arith.constant 0 : index
    %5 = vector.load %arg3[%c0_4, %c0_5] : memref<128x128xbf16, #tpu.memory_space<vmem>>, vector<128x128xbf16>
    %cst = arith.constant dense<0.000000e+00> : vector<16x128xf32>
    %6 = tpu.matmul %4, %5, %cst {dimension_numbers = #tpu.dot_dimension_numbers<[1], [0], [0], [1], [0, 0, 1, 1], [], []>} : vector<16x128xbf16>, vector<128x128xbf16>, vector<16x128xf32> -> vector<16x128xf32>
    %7 = arith.addf %3, %6 : vector<16x128xf32>
    %c0_6 = arith.constant 0 : index
    %c0_7 = arith.constant 0 : index
    %8 = vector.load %arg5[%c0_6, %c0_7] : memref<16x128xf32, #tpu.memory_space<vmem>>, vector<16x128xf32>
    tpu.vector_store %arg5[%c0_6, %c0_7], %7 {strides = array<i32>} : memref<16x128xf32, #tpu.memory_space<vmem>>, vector<16x128xf32>,
    %c0_i32_8 = arith.constant 0 : i32
    %9 = arith.cmpi eq, %arg1, %c0_i32_8 : i32
    %10 = arith.extui %9 : i1 to i32
    %c0_i32_9 = arith.constant 0 : i32
    %11 = arith.cmpi ne, %10, %c0_i32_9 : i32
    scf.if %11 {
      %c0_10 = arith.constant 0 : index
      %c0_11 = arith.constant 0 : index
      %12 = vector.load %arg5[%c0_10, %c0_11] : memref<16x128xf32, #tpu.memory_space<vmem>>, vector<16x128xf32>
      %c0_12 = arith.constant 0 : index
      %c0_13 = arith.constant 0 : index
      %13 = vector.load %arg4[%c0_12, %c0_13] : memref<1x128xf32, #tpu.memory_space<vmem>>, vector<1x128xf32>
      %14 = vector.broadcast %13 : vector<1x128xf32> to vector<16x128xf32>
      %15 = arith.addf %12, %14 : vector<16x128xf32>
      %cst_14 = arith.constant 0.000000e+00 : f32
      %16 = vector.broadcast %cst_14 : f32 to vector<16x128xf32>
      %17 = arith.maximumf %15, %16 : vector<16x128xf32>
      %c0_15 = arith.constant 0 : index
      %c0_16 = arith.constant 0 : index
      %18 = vector.load %arg5[%c0_15, %c0_16] : memref<16x128xf32, #tpu.memory_space<vmem>>, vector<16x128xf32>
      tpu.vector_store %arg5[%c0_15, %c0_16], %17 {strides = array<i32>} : memref<16x128xf32, #tpu.memory_space<vmem>>, vector<16x128xf32>,
    } else {
    }
    return
  }
  func.func @transform_0(%arg0: i32, %arg1: i32) -> (i32, i32) {
    %c0_i32 = arith.constant 0 : i32
    return %arg0, %arg1 : i32, i32
  }
  func.func @transform_1(%arg0: i32, %arg1: i32) -> (i32, i32) {
    %c0_i32 = arith.constant 0 : i32
    %c0_i32_0 = arith.constant 0 : i32
    return %arg1, %c0_i32 : i32, i32
  }
  func.func @transform_2(%arg0: i32, %arg1: i32) -> (i32, i32) {
    %c0_i32 = arith.constant 0 : i32
    %c0_i32_0 = arith.constant 0 : i32
    %c0_i32_1 = arith.constant 0 : i32
    return %c0_i32, %c0_i32_0 : i32, i32
  }
  func.func @transform_3(%arg0: i32, %arg1: i32) -> (i32, i32) {
    %c0_i32 = arith.constant 0 : i32
    %c0_i32_0 = arith.constant 0 : i32
    return %arg0, %c0_i32 : i32, i32
  }
}

</mosaic_0001>

<bundles_post_ra>
// kernel: tpu_custom_call.1
= control target key start
LH: loop header
LB: loop body
LE: loop exit
PB: predicated region body
PF: predicated region fallthrough
CT: control target
= control target key end

     0   :  { %8 = vsyncpa [#allocation3], 0  ;;  %s402_s0 = inlined_call_operand.hbm [shape: bf16[16,128], index: 0, kind: input, shape index: {}]   ;;  %s403_s1 = inlined_call_operand.hbm [shape: bf16[128,128], index: 1, kind: input, shape index: {}]   ;;  %s404_s2 = inlined_call_operand.vmem [shape: f32[1,128], index: 2, kind: input, shape index: {}]   ;;  %s405_s3 = inlined_call_operand.hbm [shape: f32[16,128], index: 3, kind: output, shape index: {}]  }
   0x1   :  { %9 = vsyncpa [#allocation6], 0 }
   0x2   :  { %10 = vsyncpa [#allocation4], 0  ;;  %s334_s12 = smov [#allocation2]   ;;  %s262_s16 = scalar_lea.hbm %s402_s0, 128 }
   0x3   :  { %s16_s13 = sshll.u32 %s334_s12, 4  ;;  %p263_p0 = scmp.ne.s32.totalorder %s402_s0, %s262_s16  ;;  %s17_s13 = int_to_ptr.vmem [resolvable:$true] %s16_s13 }
   0x4   :  { %p266_p1 = scmp.lt.u32.totalorder %s262_s16, %s402_s0 }
   0x6   :  { %p268_p2 = pnand %p266_p1, %p263_p0 }
   0x8   :  { %271 = shalt.err (!%p268_p2)
}
   0x9   :  { %s272_s21 = scalar_lea.vmem %s17_s13, 128  ;;  %p277_p4 = scmp.lt.s32.totalorder %s17_s13, %s17_s13 }
   0xa   :  { %p273_p3 = scmp.ne.s32.totalorder %s17_s13, %s272_s21  ;;  %p278_p5 = scmp.lt.s32.totalorder %s272_s21, %s272_s21 }
   0xc   :  { %p279_p6 = por %p278_p5, %p277_p4 }
   0xe   :  { %p280_p7 = pnand %p279_p6, %p273_p3 }
  0x10   :  { %283 = shalt.err (!%p280_p7)
}
  0x11   :  { %s335_s22 = smov 64   ;;  %s336_s23 = smov 4  }
  0x12   :  { %22 = dma.hbm_to_vmem [thread:$0]  %s402_s0, 128, %s17_s13, [#allocation3], %s335_s22, %s335_s22, %s336_s23  }
  0x13   :  { %s337_s26 = smov [#allocation5]   ;;  %s284_s30 = scalar_lea.hbm %s403_s1, 1024 }
  0x14   :  { %s28_s27 = sshll.u32 %s337_s26, 4  ;;  %p285_p8 = scmp.ne.s32.totalorder %s403_s1, %s284_s30  ;;  %s29_s27 = int_to_ptr.vmem [resolvable:$true] %s28_s27 }
  0x15   :  { %p288_p9 = scmp.lt.u32.totalorder %s284_s30, %s403_s1 }
  0x17   :  { %p290_p10 = pnand %p288_p9, %p285_p8 }
  0x19   :  { %293 = shalt.err (!%p290_p10)
}
  0x1a   :  { %s294_s8 = scalar_lea.vmem %s29_s27, 1024  ;;  %p299_p12 = scmp.lt.s32.totalorder %s29_s27, %s29_s27 }
  0x1b   :  { %p295_p11 = scmp.ne.s32.totalorder %s29_s27, %s294_s8  ;;  %p300_p13 = scmp.lt.s32.totalorder %s294_s8, %s294_s8 }
  0x1d   :  { %p301_p0 = por %p300_p13, %p299_p12 }
  0x1f   :  { %p302_p1 = pnand %p301_p0, %p295_p11 }
  0x21   :  { %305 = shalt.err (!%p302_p1)
}
  0x22   :  { %34 = dma.hbm_to_vmem [thread:$0]  %s403_s1, 1024, %s29_s27, [#allocation6], %s335_s22, %s335_s22, %s336_s23  }
  0x23   :  { %328 = dma.done.wait [#allocation3], 128  }
  0x24   :  { %329 = vsyncadd [#allocation3], 4294967168 }
  0x25   :  { %330 = dma.done.wait [#allocation6], 1024  }
  0x26   :  { %331 = vsyncadd [#allocation6], 4294966272  ;;  %v338_v0 = vmov 0.0   ;;  %vm339_vm0 = vmmov 0   ;;  %v253_v1 = vld [vmem:[#allocation5] sm:$0xff]   ;;  %v254_v2 = vld [vmem:[#allocation5 + $0x8] sm:$0xff]  }
  0x27   :  { %224 = vmatprep.subr.bf16.mxu0 %v338_v0  ;;  %240 = vmatprep.mubr.msk.bf16.mxu0 %vm339_vm0, %v338_v0  ;;  %v255_v3 = vld [vmem:[#allocation5 + $0x10] sm:$0xff]   ;;  %v256_v4 = vld [vmem:[#allocation5 + $0x18] sm:$0xff]   ;;  %v257_v5 = vld [vmem:[#allocation5 + $0x20] sm:$0xff]   ;;  %s340_s11 = smov [#allocation7]  }
  0x28   :  { %225 = vmatpush3.bf16.msra.mxu0 %v253_v1  ;;  %v258_v6 = vld [vmem:[#allocation5 + $0x28] sm:$0xff]   ;;  %v259_v7 = vld [vmem:[#allocation5 + $0x30] sm:$0xff]   ;;  %v260_v8 = vld [vmem:[#allocation5 + $0x38] sm:$0xff]   ;;  %s192_s12 = sshll.u32 %s340_s11, 4  ;;  %s193_s12 = int_to_ptr.vmem [resolvable:$true] %s192_s12 }
  0x29   :  { %226 = vmatprep.subr.bf16.mxu0 %v338_v0  ;;  %v261_v9 = vld [vmem:[#allocation2] sm:$0xff]   ;;  %s306_s13 = scalar_lea.vmem %s193_s12, 256  ;;  %p311_p3 = scmp.lt.s32.totalorder %s193_s12, %s193_s12 }
  0x2a   :  { %v214_v11 = vld [vmem:[%s404_s2] ss:$0 sm:$0xff]  ;;  %p307_p2 = scmp.ne.s32.totalorder %s193_s12, %s306_s13  ;;  %p312_p4 = scmp.lt.s32.totalorder %s306_s13, %s306_s13 }
  0x2c   :  { %227 = vmatpush3.bf16.msra.mxu0 %v254_v2  ;;  %p313_p5 = por %p312_p4, %p311_p3 }
  0x2d   :  { %228 = vmatprep.subr.bf16.mxu0 %v338_v0 }
  0x2e   :  { %p314_p6 = pnand %p313_p5, %p307_p2 }
  0x30   :  { %229 = vmatpush3.bf16.msra.mxu0 %v255_v3 }
  0x31   :  { %230 = vmatprep.subr.bf16.mxu0 %v338_v0 }
  0x34   :  { %231 = vmatpush3.bf16.msra.mxu0 %v256_v4 }
  0x35   :  { %232 = vmatprep.subr.bf16.mxu0 %v338_v0 }
  0x38   :  { %233 = vmatpush3.bf16.msra.mxu0 %v257_v5 }
  0x39   :  { %234 = vmatprep.subr.bf16.mxu0 %v338_v0 }
  0x3c   :  { %235 = vmatpush3.bf16.msra.mxu0 %v258_v6 }
  0x3d   :  { %236 = vmatprep.subr.bf16.mxu0 %v338_v0 }
  0x40   :  { %237 = vmatpush3.bf16.msra.mxu0 %v259_v7 }
  0x41   :  { %238 = vmatprep.subr.bf16.mxu0 %v338_v0 }
  0x44   :  { %239 = vmatpush3.bf16.msra.mxu0 %v260_v8 }
  0x47   :  { %241 = vmatmul.mubr.bf16.vlgmr.msra.gmra.mrb[0].mxu0 %v261_v9 }
 0x11a   :  { %v158_v10 = vpop.f32.mrb[0].mxu0 }
 0x11b   :  { %v242_v12 = vpop.f32.mrb[1].mxu0  ;;  %v181_v15 = vadd.f32 %v214_v11, %v158_v10 }
 0x11c   :  { %v161_v13 = vpop.f32.mrb[2].mxu0 }
 0x11d   :  { %v243_v14 = vpop.f32.mrb[3].mxu0  ;;  %v182_v16 = vadd.f32 %v214_v11, %v161_v13  ;;  %v183_v17 = vmax.f32 %v181_v15, 0.0 }
 0x11f   :  { %v184_v18 = vmax.f32 %v182_v16, 0.0  ;;  %185 = vst [vmem:[#allocation7] sm:$0xff] %v183_v17 }
 0x121   :  { %186 = vst [vmem:[#allocation7 + $0x8] sm:$0xff] %v184_v18 }
 0x122   :  { %317 = shalt.err (!%p314_p6)
}
 0x123   :  { %s318_s15 = scalar_lea.hbm %s405_s3, 256 }
 0x124   :  { %p319_p7 = scmp.ne.s32.totalorder %s405_s3, %s318_s15  ;;  %p322_p8 = scmp.lt.u32.totalorder %s318_s15, %s405_s3 }
 0x126   :  { %p324_p9 = pnand %p322_p8, %p319_p7 }
 0x128   :  { %327 = shalt.err (!%p324_p9)
}
 0x129   :  { %s341_s20 = smov 128   ;;  %s342_s21 = smov 8  }
 0x12a   :  { %198 = dma.vmem_to_hbm [thread:$0]  %s193_s12, 256, %s405_s3, [#allocation4], %s341_s20, %s341_s20, %s342_s21  }
 0x12b   :  { %332 = dma.done.wait [#allocation4], 256  }
 0x12c   :  { %333 = vsyncadd [#allocation4], 4294967040 }
 0x12d   :  { %202 = vsyncpa [#allocation3], 1 }
 0x12e   :  { %203 = vsyncpa [#allocation6], 1 }
 0x12f   :  { %204 = vsyncpa [#allocation4], 1 }

</bundles_post_ra>
